<compile_context>
chip_gen: v6e
topology: v6e:2x2x1
jax: 0.10.0
libtpu: 0.0.40
codegen_flags: <defaults>
</compile_context>

<pallas_src>
import functools
import math

import jax
import jax.numpy as jnp
from jax.experimental import pallas as pl
from jax.experimental.pallas import tpu as pltpu


def _xlogx(v: float) -> float:
    """x*log(x) with the 0*log(0)=0 convention (matches torch KLDiv/xlogy)."""
    v = float(v)
    return v * math.log(v) if v > 0.0 else 0.0


def _round_up(x: int, m: int) -> int:
    return ((x + m - 1) // m) * m


def _tpu_generation_info():
    """Returns (per-core VMEM capacity bytes, TensorCores sharing the grid)."""
    vmem_bytes = None
    try:
        info = pltpu.get_tpu_info()
        vmem_bytes = int(getattr(info, "vmem_capacity_bytes"))
    except Exception:
        vmem_bytes = None
    kind = ""
    try:
        kind = jax.devices()[0].device_kind.lower()
    except Exception:
        kind = ""
    if vmem_bytes is None:
        # v7x: 64 MiB per TensorCore; earlier generations: 128 MiB.
        vmem_bytes = (64 << 20) if ("7" in kind) else (128 << 20)
    # Grid-sharding "megacore": 2 TCs per device on v4/v5p/v7x, 1 on v5e/v6e.
    cores = 2 if any(t in kind for t in ("v4", "v5p", "7x", "v7")) else 1
    return vmem_bytes, cores


def _loss_ls_kernel(pred_ref, tgt_ref, mask_ref, out_ref, acc_ref, *,
                    off: float, conf: float, tv: int):
    s, v = pl.program_id(1), pl.program_id(2)
    n_s, n_v = pl.num_programs(1), pl.num_programs(2)

    @pl.when((s == 0) & (v == 0))
    def _():
        acc_ref[...] = jnp.zeros_like(acc_ref)

    pred = pred_ref[...].astype(jnp.float32)      # (TM, TV), upcast in-kernel
    tgt = tgt_ref[...]                            # (TM, 1) int32
    mask = mask_ref[...]                          # (TM, 1) float32

    # Fused single pass: sum_v(pred * w), w = conf at target column else off.
    # Column iota is a (1, TV) row, broadcast along sublanes in the compare,
    # instead of a full (TM, TV) iota emitted every grid step.
    col = jax.lax.broadcasted_iota(jnp.int32, (1, tv), 1) + v * tv
    w = jnp.where(col == tgt, conf, off)          # (TM, TV) via broadcasting
    acc_ref[...] += mask * jnp.sum(pred * w, axis=1, keepdims=True)

    @pl.when((s == n_s - 1) & (v == n_v - 1))
    def _():
        total = jnp.sum(acc_ref[...])
        r = jax.lax.broadcasted_iota(jnp.int32, out_ref.shape, 0)
        c = jax.lax.broadcasted_iota(jnp.int32, out_ref.shape, 1)
        out_ref[...] = jnp.where((r == 0) & (c == 0), total, jnp.float32(0.0))


def loss_with_ls(prediction, target, mask, *, size: int, smooth: float,
                 row_tile: int = 1024, vocab_tile=None, num_parallel=None):
    """prediction: (B, T, V) log-probabilities; target, mask: (B, T)."""
    B, T, V = prediction.shape
    N = B * T

    # Stream prediction in its native dtype (bf16 halves HBM traffic);
    # all math / accumulation is done in f32.
    if prediction.dtype not in (jnp.float32, jnp.bfloat16):
        prediction = prediction.astype(jnp.float32)
    pred2d = prediction.reshape(N, V)             # metadata-only reshape
    tgt2d = target.reshape(N, 1).astype(jnp.int32)
    mask2d = mask.reshape(N, 1).astype(jnp.float32)

    mask_sum = jnp.sum(mask2d)                    # denominator, plain XLA
    # NOTE: if mask is all-zero the final divide yields NaN, exactly like the
    # PyTorch module.

    confidence = 1.0 - smooth
    off = smooth / (size - 1)
    # Per-row constant sum_v labels*log(labels).  `size` only enters via
    # `off`; the smoothed-entry count is V-1 (prediction width), exactly like
    # the PyTorch module where labels = prediction.data.clone().
    h_const = _xlogx(confidence) + (V - 1) * _xlogx(off)

    # ---------------- generation/VMEM-aware tile sizing -------------------
    vmem_bytes, cores = _tpu_generation_info()
    itemsize = jnp.dtype(pred2d.dtype).itemsize
    budget = int(0.70 * vmem_bytes)               # budget for the pred tile

    def _max_rows_for(tv_):
        lane_bytes = _round_up(tv_, 128) * itemsize
        t = budget // (2 * lane_bytes)            # double-buffered pred block
        return max(8, (t // 8) * 8)

    # Vocab tiling: keep the full vocab resident when that still allows a
    # >=256-row tile; otherwise (huge V) block the vocab axis so tm stays big.
    if (vocab_tile is not None and 0 < int(vocab_tile) <= V
            and V % int(vocab_tile) == 0
            and (int(vocab_tile) % 128 == 0 or int(vocab_tile) == V)):
        tv = int(vocab_tile)
    else:
        tv = V
        if _max_rows_for(V) < 256 and V % 128 == 0 and V > 128:
            best = 128
            for d in range(128, V, 128):          # largest 128-mult divisor
                if V % d == 0 and _max_rows_for(d) >= 256:
                    best = d
            tv = best
        # TODO(synk): a huge vocab that is not a multiple of 128 falls back to
        # a full-V block with a small row tile (no masked partial vocab block).
    vsteps = V // tv

    num_parallel = cores if num_parallel is None else max(1, int(num_parallel))
    if N < 8 * num_parallel:
        num_parallel = 1
    tm = min(int(row_tile), _max_rows_for(tv))
    tm = max(8, (tm // 8) * 8)
    rows_per_core = N // num_parallel
    tm = min(tm, max(8, (rows_per_core // 8) * 8))

    total_blocks = N // tm
    if total_blocks == 0:
        n_main, steps = 0, 0
    else:
        num_parallel = min(num_parallel, total_blocks)
        steps = total_blocks // num_parallel
        n_main = num_parallel * steps * tm

    # -------- main Pallas pass over the unpadded leading n_main rows ------
    if n_main > 0:
        kernel = functools.partial(_loss_ls_kernel, off=float(off),
                                   conf=float(confidence), tv=int(tv))
        tv_pad = _round_up(tv, 128)
        footprint = (2 * tm * tv_pad * itemsize   # pred, double-buffered
                     + 2 * 2 * tm * 128 * 4       # tgt + mask blocks
                     + tm * 128 * 4               # accumulator scratch
                     + 2 * 8 * 128 * 4)           # output block
        vmem_limit = int(min(max(footprint + (4 << 20), 32 << 20),
                             int(0.9 * vmem_bytes)))

        partials = pl.pallas_call(
            kernel,
            out_shape=jax.ShapeDtypeStruct((num_parallel * 8, 128),
                                           jnp.float32),
            grid_spec=pltpu.PrefetchScalarGridSpec(
                num_scalar_prefetch=0,
                grid=(num_parallel, steps, vsteps),
                in_specs=[
                    pl.BlockSpec((tm, tv), lambda p, s, v: (p * steps + s, v)),
                    pl.BlockSpec((tm, 1), lambda p, s, v: (p * steps + s, 0)),
                    pl.BlockSpec((tm, 1), lambda p, s, v: (p * steps + s, 0)),
                ],
                out_specs=pl.BlockSpec((8, 128), lambda p, s, v: (p, 0)),
                scratch_shapes=[pltpu.VMEM((tm, 1), jnp.float32)],
            ),
            compiler_params=pltpu.CompilerParams(
                dimension_semantics=("parallel", "arbitrary", "arbitrary"),
                vmem_limit_bytes=vmem_limit),
        )(pred2d, tgt2d, mask2d)
        kernel_term = jnp.sum(partials)
    else:
        kernel_term = jnp.float32(0.0)

    # -------- tail rows (< num_parallel*tm of them), closed-form XLA -------
    if n_main < N:
        pred_t = pred2d[n_main:].astype(jnp.float32)
        tgt_t = tgt2d[n_main:, 0]
        msk_t = mask2d[n_main:, 0]
        p_tgt = jnp.take_along_axis(pred_t, tgt_t[:, None], axis=1)[:, 0]
        tail_term = jnp.sum(msk_t * (off * jnp.sum(pred_t, axis=1)
                                     + (confidence - off) * p_tgt))
    else:
        tail_term = jnp.float32(0.0)

    # row_kl = h_const - sum_v(pred*w)  =>  fold h_const outside the kernel.
    numerator = h_const * mask_sum - (kernel_term + tail_term)
    return numerator / mask_sum


def loss_with_ls_ref(prediction, target, mask, *, size: int, smooth: float):
    """Pure-JAX reference mirroring the PyTorch module."""
    B, T, V = prediction.shape
    pred = prediction.reshape(-1, V).astype(jnp.float32)
    tgt = target.reshape(-1)
    msk = mask.reshape(-1).astype(jnp.float32)
    confidence = 1.0 - smooth
    off = smooth / (size - 1)
    labels = jnp.full_like(pred, off)
    labels = labels.at[jnp.arange(pred.shape[0]), tgt].set(confidence)
    lab_log_lab = jnp.where(labels > 0, labels * jnp.log(labels), 0.0)
    kl = lab_log_lab - labels * pred
    return (kl.sum(axis=1) * msk).sum() / msk.sum()


if __name__ == "__main__":
    smooth = 0.1

    # Case 1: small shapes implied by the module (batch=2, max_words=8, V=32).
    key = jax.random.PRNGKey(0)
    k1, k2, k3 = jax.random.split(key, 3)
    B, T, V = 2, 8, 32
    logits = jax.random.normal(k1, (B, T, V), dtype=jnp.float32)
    prediction = jax.nn.log_softmax(logits, axis=-1)   # KLDivLoss takes log-probs
    target = jax.random.randint(k2, (B, T), 0, V, dtype=jnp.int32)
    mask = (jax.random.uniform(k3, (B, T)) > 0.3).astype(jnp.float32)
    mask = mask.at[0, 0].set(1.0)                      # non-zero mask sum

    loss = loss_with_ls(prediction, target, mask, size=V, smooth=smooth)
    loss = jax.block_until_ready(loss)
    ref = loss_with_ls_ref(prediction, target, mask, size=V, smooth=smooth)
    assert jnp.allclose(loss, ref, rtol=1e-4, atol=1e-4), (loss, ref)

    # Case 2: exercises vocab-axis blocking, multiple row steps and the
    # unpadded XLA tail (N=50 not a multiple of the row tile).
    k4, k5, k6 = jax.random.split(jax.random.PRNGKey(1), 3)
    B2, T2, V2 = 2, 25, 256
    logits2 = jax.random.normal(k4, (B2, T2, V2), dtype=jnp.float32)
    pred2 = jax.nn.log_softmax(logits2, axis=-1)
    tgt2 = jax.random.randint(k5, (B2, T2), 0, V2, dtype=jnp.int32)
    msk2 = (jax.random.uniform(k6, (B2, T2)) > 0.3).astype(jnp.float32)
    msk2 = msk2.at[0, 0].set(1.0)
    loss2 = loss_with_ls(pred2, tgt2, msk2, size=V2, smooth=smooth,
                         row_tile=8, vocab_tile=128)
    loss2 = jax.block_until_ready(loss2)
    ref2 = loss_with_ls_ref(pred2, tgt2, msk2, size=V2, smooth=smooth)
    assert jnp.allclose(loss2, ref2, rtol=1e-4, atol=1e-4), (loss2, ref2)

    print("KERNEL_OK")
</pallas_src>

<mosaic_0001>
module attributes {stable_mosaic.version = 11 : i64} {
  func.func @_loss_ls_kernel(%arg0: i32, %arg1: i32, %arg2: i32, %arg3: memref<16x32xf32, #tpu.memory_space<vmem>>, %arg4: memref<16x1xi32, #tpu.memory_space<vmem>>, %arg5: memref<16x1xf32, #tpu.memory_space<vmem>>, %arg6: memref<8x128xf32, #tpu.memory_space<vmem>>, %arg7: memref<16x1xf32, #tpu.memory_space<vmem>>) attributes {dimension_semantics = [#tpu.dimension_semantics<parallel>, #tpu.dimension_semantics<arbitrary>, #tpu.dimension_semantics<arbitrary>], iteration_bounds = array<i64: 1, 1, 1>, scalar_prefetch = 0 : i64, scratch_operands = 1 : i64, tpu.core_type = #tpu.core_type<tc>, window_params = [{transform_indices = @transform_0, window_bounds = array<i64: 16, 32>}, {transform_indices = @transform_1, window_bounds = array<i64: 16, 1>}, {transform_indices = @transform_2, window_bounds = array<i64: 16, 1>}, {transform_indices = @transform_3, window_bounds = array<i64: 8, 128>}]} {
    %c0_i32 = arith.constant 0 : i32
    %0 = arith.cmpi eq, %arg1, %c0_i32 : i32
    %c0_i32_0 = arith.constant 0 : i32
    %1 = arith.cmpi eq, %arg2, %c0_i32_0 : i32
    %2 = arith.andi %0, %1 : i1
    %3 = arith.extui %2 : i1 to i32
    %c0_i32_1 = arith.constant 0 : i32
    %4 = arith.cmpi ne, %3, %c0_i32_1 : i32
    scf.if %4 {
      %cst_16 = arith.constant 0.000000e+00 : f32
      %30 = vector.broadcast %cst_16 : f32 to vector<16x1xf32>
      %c0_17 = arith.constant 0 : index
      %c0_18 = arith.constant 0 : index
      %31 = vector.load %arg7[%c0_17, %c0_18] : memref<16x1xf32, #tpu.memory_space<vmem>>, vector<16x1xf32>
      tpu.vector_store %arg7[%c0_17, %c0_18], %30 {strides = array<i32>} : memref<16x1xf32, #tpu.memory_space<vmem>>, vector<16x1xf32>,
    } else {
    }
    %c0 = arith.constant 0 : index
    %c0_2 = arith.constant 0 : index
    %5 = vector.load %arg3[%c0, %c0_2] : memref<16x32xf32, #tpu.memory_space<vmem>>, vector<16x32xf32>
    %c0_3 = arith.constant 0 : index
    %c0_4 = arith.constant 0 : index
    %6 = vector.load %arg4[%c0_3, %c0_4] : memref<16x1xi32, #tpu.memory_space<vmem>>, vector<16x1xi32>
    %c0_5 = arith.constant 0 : index
    %c0_6 = arith.constant 0 : index
    %7 = vector.load %arg5[%c0_5, %c0_6] : memref<16x1xf32, #tpu.memory_space<vmem>>, vector<16x1xf32>
    %8 = tpu.iota {dimensions = array<i32: 1>} : vector<1x32xi32>
    %c32_i32 = arith.constant 32 : i32
    %9 = arith.muli %arg2, %c32_i32 : i32
    %10 = vector.broadcast %9 : i32 to vector<1x32xi32>
    %11 = arith.addi %8, %10 : vector<1x32xi32>
    %12 = vector.broadcast %11 : vector<1x32xi32> to vector<16x32xi32>
    %13 = vector.broadcast %6 : vector<16x1xi32> to vector<16x32xi32>
    %14 = arith.cmpi eq, %12, %13 : vector<16x32xi32>
    %cst = arith.constant 0.899999976 : f32
    %cst_7 = arith.constant 0.0032258064 : f32
    %15 = vector.broadcast %cst : f32 to vector<16x32xf32>
    %16 = vector.broadcast %cst_7 : f32 to vector<16x32xf32>
    %17 = arith.select %14, %15, %16 : vector<16x32xi1>, vector<16x32xf32>
    %c0_8 = arith.constant 0 : index
    %c0_9 = arith.constant 0 : index
    %18 = vector.load %arg7[%c0_8, %c0_9] : memref<16x1xf32, #tpu.memory_space<vmem>>, vector<16x1xf32>
    %19 = arith.mulf %5, %17 : vector<16x32xf32>
    %cst_10 = arith.constant dense<0.000000e+00> : vector<16xf32>
    %20 = vector.multi_reduction <add>, %19, %cst_10 [1] : vector<16x32xf32> to vector<16xf32>
    %21 = vector.shape_cast %20 : vector<16xf32> to vector<16x1xf32>
    %22 = arith.mulf %7, %21 : vector<16x1xf32>
    %23 = arith.addf %18, %22 : vector<16x1xf32>
    %c0_11 = arith.constant 0 : index
    %c0_12 = arith.constant 0 : index
    %24 = vector.load %arg7[%c0_11, %c0_12] : memref<16x1xf32, #tpu.memory_space<vmem>>, vector<16x1xf32>
    tpu.vector_store %arg7[%c0_11, %c0_12], %23 {strides = array<i32>} : memref<16x1xf32, #tpu.memory_space<vmem>>, vector<16x1xf32>,
    %c0_i32_13 = arith.constant 0 : i32
    %25 = arith.cmpi eq, %arg1, %c0_i32_13 : i32
    %c0_i32_14 = arith.constant 0 : i32
    %26 = arith.cmpi eq, %arg2, %c0_i32_14 : i32
    %27 = arith.andi %25, %26 : i1
    %28 = arith.extui %27 : i1 to i32
    %c0_i32_15 = arith.constant 0 : i32
    %29 = arith.cmpi ne, %28, %c0_i32_15 : i32
    scf.if %29 {
      %c0_16 = arith.constant 0 : index
      %c0_17 = arith.constant 0 : index
      %30 = vector.load %arg7[%c0_16, %c0_17] : memref<16x1xf32, #tpu.memory_space<vmem>>, vector<16x1xf32>
      %31 = vector.shape_cast %30 : vector<16x1xf32> to vector<1x16x1xf32>
      %cst_18 = arith.constant dense<0.000000e+00> : vector<1xf32>
      %32 = vector.multi_reduction <add>, %31, %cst_18 [1, 2] : vector<1x16x1xf32> to vector<1xf32>
      %33 = vector.shape_cast %32 : vector<1xf32> to vector<1x1x1xf32>
      %34 = vector.extract %33[0, 0, 0] : f32 from vector<1x1x1xf32>
      %35 = tpu.iota {dimensions = array<i32: 0>} : vector<8x128xi32>
      %36 = tpu.iota {dimensions = array<i32: 1>} : vector<8x128xi32>
      %c0_i32_19 = arith.constant 0 : i32
      %37 = vector.broadcast %c0_i32_19 : i32 to vector<8x128xi32>
      %38 = arith.cmpi eq, %35, %37 : vector<8x128xi32>
      %c0_i32_20 = arith.constant 0 : i32
      %39 = vector.broadcast %c0_i32_20 : i32 to vector<8x128xi32>
      %40 = arith.cmpi eq, %36, %39 : vector<8x128xi32>
      %41 = arith.andi %38, %40 : vector<8x128xi1>
      %cst_21 = arith.constant 0.000000e+00 : f32
      %42 = vector.broadcast %34 : f32 to vector<8x128xf32>
      %43 = vector.broadcast %cst_21 : f32 to vector<8x128xf32>
      %44 = arith.select %41, %42, %43 : vector<8x128xi1>, vector<8x128xf32>
      %c0_22 = arith.constant 0 : index
      %c0_23 = arith.constant 0 : index
      %45 = vector.load %arg6[%c0_22, %c0_23] : memref<8x128xf32, #tpu.memory_space<vmem>>, vector<8x128xf32>
      tpu.vector_store %arg6[%c0_22, %c0_23], %44 {strides = array<i32>} : memref<8x128xf32, #tpu.memory_space<vmem>>, vector<8x128xf32>,
    } else {
    }
    return
  }
  func.func @transform_0(%arg0: i32, %arg1: i32, %arg2: i32) -> (i32, i32) {
    %c1_i32 = arith.constant 1 : i32
    %0 = arith.muli %arg0, %c1_i32 : i32
    %1 = arith.addi %0, %arg1 : i32
    %c0_i32 = arith.constant 0 : i32
    return %1, %arg2 : i32, i32
  }
  func.func @transform_1(%arg0: i32, %arg1: i32, %arg2: i32) -> (i32, i32) {
    %c1_i32 = arith.constant 1 : i32
    %0 = arith.muli %arg0, %c1_i32 : i32
    %1 = arith.addi %0, %arg1 : i32
    %c0_i32 = arith.constant 0 : i32
    %c0_i32_0 = arith.constant 0 : i32
    return %1, %c0_i32 : i32, i32
  }
  func.func @transform_2(%arg0: i32, %arg1: i32, %arg2: i32) -> (i32, i32) {
    %c1_i32 = arith.constant 1 : i32
    %0 = arith.muli %arg0, %c1_i32 : i32
    %1 = arith.addi %0, %arg1 : i32
    %c0_i32 = arith.constant 0 : i32
    %c0_i32_0 = arith.constant 0 : i32
    return %1, %c0_i32 : i32, i32
  }
  func.func @transform_3(%arg0: i32, %arg1: i32, %arg2: i32) -> (i32, i32) {
    %c0_i32 = arith.constant 0 : i32
    %c0_i32_0 = arith.constant 0 : i32
    return %arg0, %c0_i32 : i32, i32
  }
}

</mosaic_0001>

<bundles_post_ra>
// kernel: tpu_custom_call.1
= control target key start
LH: loop header
LB: loop body
LE: loop exit
PB: predicated region body
PF: predicated region fallthrough
CT: control target
= control target key end

     0   :  { %v214_v1 = vmov 0   ;;  %s265_s0 = inlined_call_operand.vmem [shape: f32[16,32], index: 0, kind: input, shape index: {}]   ;;  %s266_s1 = inlined_call_operand.vmem [shape: s32[16,1], index: 1, kind: input, shape index: {}]   ;;  %s267_s2 = inlined_call_operand.vmem [shape: f32[16,1], index: 2, kind: input, shape index: {}]   ;;  %s268_s3 = inlined_call_operand.hbm [shape: f32[8,128], index: 3, kind: output, shape index: {}]  }
   0x1   :  { %v92_v0 = vld [vmem:[%s266_s1] sm:$0xff]  ;;  %191 = vset.pattern.permute.xlu0 %v214_v1 }
   0x2   :  { %8 = vsyncpa [#allocation4], 0  ;;  %102 = vperm.xlu0 %191, %v92_v0   ;;  %v93_v2 = vld [vmem:[%s266_s1 + $0x8] sm:$0xff]  ;;  %v96_v3 = vlaneseq  ;;  %v90_v6 = vld [vmem:[%s265_s0] sm:$0xff]  ;;  %v215_v7 = vmov 0.0032258064  }
   0x3   :  { %vm115_vm1 = vcmask 261120   ;;  %v91_v11 = vld [vmem:[%s265_s0 + $0x8] sm:$0xff]  ;;  %vm87_vm3 = vcmask 7168   ;;  %v216_v16 = vmov 0.0   ;;  %v94_v17 = vld [vmem:[%s267_s2] sm:$0xff] }
   0x4   :  { %v97_v4 = vand.u32 127, %v96_v3  ;;  %88 = vst.msk [vmem:[#allocation2] sm:$0xff] %vm87_vm3, %v216_v16  ;;  %89 = vst.msk [vmem:[#allocation2 + $0x8] sm:$0xff] %vm87_vm3, %v216_v16  ;;  %v95_v21 = vld [vmem:[%s267_s2 + $0x8] sm:$0xff]  ;;  %v146_v39 = vshrl.u32 %v96_v3, 7  ;;  %s217_s2 = smov [#allocation3]  }
   0x5   :  { %s159_s22 = sshll.u32 %s217_s2, 4  ;;  %s160_s22 = int_to_ptr.vmem [resolvable:$true] %s159_s22 }
   0x6   :  { %105 = vperm.xlu0 %191, %v93_v2   ;;  %vm147_vm4 = vcmp.eq.s32.totalorder %v146_v39, 0  ;;  %vm148_vm5 = vcmp.eq.s32.totalorder %v97_v4, 0  ;;  %s192_s24 = scalar_lea.vmem %s160_s22, 128  ;;  %p197_p1 = scmp.lt.s32.totalorder %s160_s22, %s160_s22 }
   0x7   :  { %vm149_vm6 = vmand %vm147_vm4, %vm148_vm5  ;;  %p193_p0 = scmp.ne.s32.totalorder %s160_s22, %s192_s24  ;;  %p198_p2 = scmp.lt.s32.totalorder %s192_s24, %s192_s24 }
   0x9   :  { %p199_p3 = por %p198_p2, %p197_p1 }
   0xb   :  { %v111_v19 = vld [vmem:[#allocation2] sm:$0xff]  ;;  %v112_v24 = vld [vmem:[#allocation2 + $0x8] sm:$0xff]  ;;  %p200_p4 = pnand %p199_p3, %p193_p0 }
  0x7d   :  { %v103_v5 = vpop.permute.xlu0 %102 }
  0x7e   :  { %vm107_vm0 = vcmp.eq.s32.totalorder %v97_v4, %v103_v5 }
  0x7f   :  { %v109_v8 = vsel %vm107_vm0, 0.9, %v215_v7 }
  0x80   :  { %v113_v9 = vmul.f32 %v109_v8, %v90_v6 }
  0x81   :  { %v106_v10 = vpop.permute.xlu0 %105 }
  0x82   :  { %vm108_vm2 = vcmp.eq.s32.totalorder %v97_v4, %v106_v10  ;;  %v116_v12 = vsel %vm115_vm1, %v113_v9, 0.0 }
  0x83   :  { %v110_v13 = vsel %vm108_vm2, 0.9, %v215_v7  ;;  %117 = vadd.xlane.f32.xlu1 %v116_v12 }
  0x84   :  { %v114_v14 = vmul.f32 %v110_v13, %v91_v11 }
  0x86   :  { %v119_v15 = vsel %vm115_vm1, %v114_v14, 0.0 }
  0x87   :  { %120 = vadd.xlane.f32.xlu1 %v119_v15 }
 0x10c   :  { %v118_v18 = vpop.xlane.xlu1 %117 }
 0x10d   :  { %v122_v20 = vmul.f32 %v118_v18, %v94_v17 }
 0x10f   :  { %v124_v22 = vadd.f32 %v122_v20, %v111_v19 }
 0x110   :  { %v121_v23 = vpop.xlane.xlu1 %120 }
 0x111   :  { %127 = vst.msk [vmem:[#allocation2] sm:$0xff] %vm87_vm3, %v124_v22  ;;  %v123_v25 = vmul.f32 %v121_v23, %v95_v21 }
 0x113   :  { %v125_v26 = vadd.f32 %v123_v25, %v112_v24 }
 0x115   :  { %128 = vst.msk [vmem:[#allocation2 + $0x8] sm:$0xff] %vm87_vm3, %v125_v26 }
 0x118   :  { %v131_v27 = vld [vmem:[#allocation2] sm:$0xff] }
 0x119   :  { %v133_v29 = vsel %vm87_vm3, %v131_v27, 0.0 }
 0x11c   :  { %v132_v28 = vld [vmem:[#allocation2 + $0x8] sm:$0xff] }
 0x11d   :  { %v134_v30 = vsel %vm87_vm3, %v132_v28, 0.0 }
 0x11e   :  { %v135_v31 = vadd.f32 %v134_v30, %v133_v29 }
 0x120   :  { %136 = vadd.xlane.f32.xlu0 %v135_v31 }
 0x1a9   :  { %v137_v32 = vpop.xlane.xlu0 %136 }
 0x1aa   :  { %v138_v33 = vrot.slane %v137_v32, 4 }
 0x1ac   :  { %v139_v34 = vadd.f32 %v138_v33, %v137_v32 }
 0x1ae   :  { %v140_v35 = vrot.slane %v139_v34, 2 }
 0x1b0   :  { %v141_v36 = vadd.f32 %v140_v35, %v139_v34 }
 0x1b2   :  { %v142_v37 = vrot.slane %v141_v36, 1 }
 0x1b4   :  { %v143_v38 = vadd.f32 %v142_v37, %v141_v36 }
 0x1b6   :  { %185 = vpush %v143_v38 }
 0x1e7   :  { %s186_s23 = spop %185 }
 0x1e8   :  { %v150_v40 = vstv %s186_s23 }
 0x1e9   :  { %v151_v41 = vsel %vm149_vm6, %v150_v40, 0.0 }
 0x1ea   :  { %152 = vst [vmem:[#allocation3] sm:$0xff] %v151_v41 }
 0x1eb   :  { %203 = shalt.err (!%p200_p4)
}
 0x1ec   :  { %162 = dma.vmem_to_hbm [thread:$0]  %s160_s22, 128, %s268_s3, [#allocation4]  }
 0x1ed   :  { %212 = dma.done.wait [#allocation4], 128  }
 0x1ee   :  { %213 = vsyncadd [#allocation4], 4294967168 }
 0x1ef   :  { %166 = vsyncpa [#allocation4], 1 }

</bundles_post_ra>
